<compile_context>
chip_gen: v5e
topology: v5e:2x2
jax: 0.10.0
libtpu: 0.0.40
codegen_flags: <defaults>
</compile_context>

<pallas_src>
import jax
import jax.numpy as jnp
from jax.experimental import pallas as pl
from jax.experimental.pallas import tpu as pltpu


def dynamiconv_kernel(u_ref, w_ref, dw_ref, b_ref, o_ref):
    # u_ref: (K, TL), w_ref: (O, K), dw_ref: (K, 1), b_ref: (O, 1), o_ref: (O, TL)
    u = u_ref[...]

    # Main matmul first so the MXU starts immediately (f32 accumulation).
    y = jnp.dot(w_ref[...], u, preferred_element_type=jnp.float32)        # (O, TL)

    # Dynamic gate on EUP (sigmoid) + VPU (mul) + XLU (sublane reduce); runs
    # concurrently with / hidden under the MXU matmul above.
    sig = jax.nn.sigmoid(u.astype(jnp.float32))                           # (K, TL)
    g = jnp.sum(sig * dw_ref[...].astype(jnp.float32), axis=0,
                keepdims=True)                                            # (1, TL)

    o_ref[...] = (y * g + b_ref[...].astype(jnp.float32)).astype(o_ref.dtype)


def _im2col(x, k, stride, padding, oh, ow):
    # Matches torch.nn.Unfold ordering: feature index = c*k*k + i*k + j,
    # spatial index iterates output positions row-major.
    B, C, _, _ = x.shape
    xp = jnp.pad(x, ((0, 0), (0, 0), (padding, padding), (padding, padding)))
    patches = []
    for i in range(k):
        for j in range(k):
            patches.append(xp[:, :, i:i + stride * oh:stride, j:j + stride * ow:stride])
    u = jnp.stack(patches, axis=2)            # (B, C, k*k, oh, ow)
    return u.reshape(B, C * k * k, oh * ow)   # (B, K, L)


def _round_up(x, m):
    return ((x + m - 1) // m) * m


def dynamiconv_forward(x, weight, dweight, bias, *, kernel_size=3, stride=1,
                       padding=1, use_bias=True, tile_l=512):
    B, C, H, W = x.shape
    O = weight.shape[0]
    k = kernel_size
    oh = (H + 2 * padding - k) // stride + 1
    ow = (W + 2 * padding - k) // stride + 1
    L = oh * ow
    K = C * k * k

    u = _im2col(x, k, stride, padding, oh, ow)                 # (B, K, L)
    # Keep the native input dtype for the streamed/MXU operands (bf16 in -> bf16
    # HBM traffic); only the small bias stays f32 for the add.
    w2 = weight.reshape(O, K).astype(x.dtype)
    dw2 = dweight.reshape(K, 1).astype(x.dtype)                # column for VPU gate
    b2 = (bias if use_bias else jnp.zeros_like(bias)).reshape(O, 1).astype(jnp.float32)

    # Lane tiling: pad L to a multiple of the tile instead of asserting.
    tile_l_eff = min(tile_l, _round_up(L, 128))
    L_pad = _round_up(L, tile_l_eff)
    if L_pad != L:
        u = jnp.pad(u, ((0, 0), (0, 0), (0, L_pad - L)))
    grid = (B, L_pad // tile_l_eff)

    # Per-generation-safe VMEM budget: double-buffered u + out tiles plus the
    # (double-buffered) resident weight/dweight/bias, with headroom; clamp so it
    # also fits v7x's 64 MiB physical VMEM.
    itemsize = jnp.dtype(x.dtype).itemsize
    vmem_need = (2 * K * tile_l_eff * itemsize            # u (double buffered)
                 + 2 * O * tile_l_eff * itemsize          # out (double buffered)
                 + 2 * (O * K + K) * itemsize             # resident weight + dweight
                 + 2 * O * 4)                             # resident bias
    vmem_limit = max(min(2 * vmem_need + (4 << 20), 48 << 20), 16 << 20)

    cost = pl.CostEstimate(
        flops=2 * B * O * K * L + 2 * B * K * L,          # main matmul + gate reduce
        transcendentals=B * K * L,                        # sigmoid
        bytes_accessed=(B * K * L_pad + B * O * L_pad) * itemsize
                       + (O * K + K) * itemsize + O * 4,
    )

    out = pl.pallas_call(
        dynamiconv_kernel,
        out_shape=jax.ShapeDtypeStruct((B, O, L_pad), x.dtype),
        grid_spec=pltpu.PrefetchScalarGridSpec(
            num_scalar_prefetch=0,
            grid=grid,
            in_specs=[
                pl.BlockSpec((None, K, tile_l_eff), lambda b, l: (b, 0, l)),  # u tile
                pl.BlockSpec((O, K), lambda b, l: (0, 0)),                    # weight (resident)
                pl.BlockSpec((K, 1), lambda b, l: (0, 0)),                    # dweight column
                pl.BlockSpec((O, 1), lambda b, l: (0, 0)),                    # bias
            ],
            out_specs=pl.BlockSpec((None, O, tile_l_eff), lambda b, l: (b, 0, l)),
        ),
        compiler_params=pltpu.CompilerParams(
            dimension_semantics=("parallel", "parallel"),
            vmem_limit_bytes=int(vmem_limit)),
        cost_estimate=cost,
    )(u, w2, dw2, b2)

    out = out[:, :, :L]
    # Mirror the PyTorch view() convention exactly.
    if stride == 2:
        oh, ow = H // 2, W // 2
    else:
        oh, ow = H, W
    return out.reshape(B, O, oh, ow)


def dynamiconv_ref(x, weight, dweight, bias, *, kernel_size=3, stride=1,
                   padding=1, use_bias=True):
    # Pure-JAX reference mirroring the PyTorch forward exactly.
    B, C, H, W = x.shape
    O = weight.shape[0]
    k = kernel_size
    oh = (H + 2 * padding - k) // stride + 1
    ow = (W + 2 * padding - k) // stride + 1
    u = _im2col(x, k, stride, padding, oh, ow)                       # (B, K, L)
    g = jnp.einsum('k,bkl->bl', dweight.reshape(-1), jax.nn.sigmoid(u))
    y = jnp.einsum('ok,bkl->bol', weight.reshape(O, -1), u * g[:, None, :])
    if use_bias:
        y = y + bias[None, :, None]
    if stride == 2:
        H, W = H // 2, W // 2
    return y.reshape(B, O, H, W)


if __name__ == "__main__":
    B, C, H, W = 2, 4, 16, 16
    O, k, stride, padding = 8, 3, 1, 1

    key = jax.random.PRNGKey(0)
    kx, kw, kd = jax.random.split(key, 3)

    x = jax.random.normal(kx, (B, C, H, W), dtype=jnp.float32)
    # Deterministic kaiming_normal_(mode='fan_out', relu) style init.
    fan_out_w = O * k * k
    weight = jax.random.normal(kw, (O, C, k, k), dtype=jnp.float32) * jnp.sqrt(2.0 / fan_out_w)
    fan_out_d = 1 * k * k
    dweight = jax.random.normal(kd, (1, C, k, k), dtype=jnp.float32) * jnp.sqrt(2.0 / fan_out_d)
    bias = jnp.ones((O,), dtype=jnp.float32)  # nn.Parameter(torch.ones(out_channel))

    out = dynamiconv_forward(x, weight, dweight, bias,
                             kernel_size=k, stride=stride, padding=padding, use_bias=True)
    out = jax.block_until_ready(out)

    ref = dynamiconv_ref(x, weight, dweight, bias,
                         kernel_size=k, stride=stride, padding=padding, use_bias=True)
    assert out.shape == (B, O, H, W), out.shape
    assert jnp.allclose(out, ref, atol=1e-4, rtol=1e-4), float(jnp.max(jnp.abs(out - ref)))

    print("KERNEL_OK")
</pallas_src>

<mosaic_0001>
module attributes {stable_mosaic.version = 11 : i64} {
  func.func @dynamiconv_kernel(%arg0: i32, %arg1: i32, %arg2: memref<1x36x256xf32, #tpu.memory_space<vmem>>, %arg3: memref<8x36xf32, #tpu.memory_space<vmem>>, %arg4: memref<36x1xf32, #tpu.memory_space<vmem>>, %arg5: memref<8x1xf32, #tpu.memory_space<vmem>>, %arg6: memref<1x8x256xf32, #tpu.memory_space<vmem>>) attributes {dimension_semantics = [#tpu.dimension_semantics<parallel>, #tpu.dimension_semantics<parallel>], iteration_bounds = array<i64: 2, 1>, scalar_prefetch = 0 : i64, scratch_operands = 0 : i64, tpu.core_type = #tpu.core_type<tc>, window_params = [{transform_indices = @transform_0, window_bounds = array<i64: 1, 36, 256>}, {pipeline_mode = #tpu.pipeline_mode<synchronous>, transform_indices = @transform_1, window_bounds = array<i64: 8, 36>}, {pipeline_mode = #tpu.pipeline_mode<synchronous>, transform_indices = @transform_2, window_bounds = array<i64: 36, 1>}, {pipeline_mode = #tpu.pipeline_mode<synchronous>, transform_indices = @transform_3, window_bounds = array<i64: 8, 1>}, {transform_indices = @transform_4, window_bounds = array<i64: 1, 8, 256>}]} {
    %c0 = arith.constant 0 : index
    %c0_0 = arith.constant 0 : index
    %c0_1 = arith.constant 0 : index
    %0 = vector.load %arg2[%c0, %c0_0, %c0_1] : memref<1x36x256xf32, #tpu.memory_space<vmem>>, vector<1x36x256xf32>
    %1 = vector.shape_cast %0 : vector<1x36x256xf32> to vector<36x256xf32>
    %c0_2 = arith.constant 0 : index
    %c0_3 = arith.constant 0 : index
    %2 = vector.load %arg3[%c0_2, %c0_3] : memref<8x36xf32, #tpu.memory_space<vmem>>, vector<8x36xf32>
    %cst = arith.constant dense<0.000000e+00> : vector<8x256xf32>
    %3 = tpu.matmul %2, %1, %cst {dimension_numbers = #tpu.dot_dimension_numbers<[1], [0], [0], [1], [0, 0, 1, 1], [], []>} : vector<8x36xf32>, vector<36x256xf32>, vector<8x256xf32> -> vector<8x256xf32>
    %4 = arith.negf %1 : vector<36x256xf32>
    %5 = math.exp %4 : vector<36x256xf32>
    %cst_4 = arith.constant 1.000000e+00 : f32
    %6 = vector.broadcast %cst_4 : f32 to vector<36x256xf32>
    %7 = arith.addf %6, %5 : vector<36x256xf32>
    %8 = arith.divf %6, %7 : vector<36x256xf32>
    %c0_5 = arith.constant 0 : index
    %c0_6 = arith.constant 0 : index
    %9 = vector.load %arg4[%c0_5, %c0_6] : memref<36x1xf32, #tpu.memory_space<vmem>>, vector<36x1xf32>
    %10 = vector.broadcast %9 : vector<36x1xf32> to vector<36x256xf32>
    %11 = arith.mulf %8, %10 : vector<36x256xf32>
    %cst_7 = arith.constant dense<0.000000e+00> : vector<256xf32>
    %12 = vector.multi_reduction <add>, %11, %cst_7 [0] : vector<36x256xf32> to vector<256xf32>
    %13 = vector.shape_cast %12 : vector<256xf32> to vector<1x256xf32>
    %14 = vector.broadcast %13 : vector<1x256xf32> to vector<8x256xf32>
    %15 = arith.mulf %3, %14 : vector<8x256xf32>
    %c0_8 = arith.constant 0 : index
    %c0_9 = arith.constant 0 : index
    %16 = vector.load %arg5[%c0_8, %c0_9] : memref<8x1xf32, #tpu.memory_space<vmem>>, vector<8x1xf32>
    %17 = vector.broadcast %16 : vector<8x1xf32> to vector<8x256xf32>
    %18 = arith.addf %15, %17 : vector<8x256xf32>
    %c0_10 = arith.constant 0 : index
    %c0_11 = arith.constant 0 : index
    %c0_12 = arith.constant 0 : index
    %19 = vector.load %arg6[%c0_10, %c0_11, %c0_12] : memref<1x8x256xf32, #tpu.memory_space<vmem>>, vector<1x8x256xf32>
    %20 = vector.shape_cast %19 : vector<1x8x256xf32> to vector<8x256xf32>
    %21 = vector.shape_cast %18 : vector<8x256xf32> to vector<1x8x256xf32>
    tpu.vector_store %arg6[%c0_10, %c0_11, %c0_12], %21 {strides = array<i32>} : memref<1x8x256xf32, #tpu.memory_space<vmem>>, vector<1x8x256xf32>,
    return
  }
  func.func @transform_0(%arg0: i32, %arg1: i32) -> (i32, i32, i32) {
    %c0_i32 = arith.constant 0 : i32
    %c0_i32_0 = arith.constant 0 : i32
    return %arg0, %c0_i32, %arg1 : i32, i32, i32
  }
  func.func @transform_1(%arg0: i32, %arg1: i32) -> (i32, i32) {
    %c0_i32 = arith.constant 0 : i32
    %c0_i32_0 = arith.constant 0 : i32
    %c0_i32_1 = arith.constant 0 : i32
    return %c0_i32, %c0_i32_0 : i32, i32
  }
  func.func @transform_2(%arg0: i32, %arg1: i32) -> (i32, i32) {
    %c0_i32 = arith.constant 0 : i32
    %c0_i32_0 = arith.constant 0 : i32
    %c0_i32_1 = arith.constant 0 : i32
    return %c0_i32, %c0_i32_0 : i32, i32
  }
  func.func @transform_3(%arg0: i32, %arg1: i32) -> (i32, i32) {
    %c0_i32 = arith.constant 0 : i32
    %c0_i32_0 = arith.constant 0 : i32
    %c0_i32_1 = arith.constant 0 : i32
    return %c0_i32, %c0_i32_0 : i32, i32
  }
  func.func @transform_4(%arg0: i32, %arg1: i32) -> (i32, i32, i32) {
    %c0_i32 = arith.constant 0 : i32
    %c0_i32_0 = arith.constant 0 : i32
    return %arg0, %c0_i32, %arg1 : i32, i32, i32
  }
}

</mosaic_0001>

<bundles_post_ra>
// kernel: tpu_custom_call.1
= control target key start
LH: loop header
LB: loop body
LE: loop exit
PB: predicated region body
PF: predicated region fallthrough
CT: control target
= control target key end

     0   :  { %9 = vsyncpa [#allocation3], 0  ;;  %s1318_s0 = inlined_call_operand.vmem [shape: f32[2,36,256], index: 0, kind: input, shape index: {}]   ;;  %s1319_s1 = inlined_call_operand.vmem [shape: f32[8,36], index: 1, kind: input, shape index: {}]   ;;  %s1320_s2 = inlined_call_operand.vmem [shape: f32[36,1], index: 2, kind: input, shape index: {}]   ;;  %s1321_s3 = inlined_call_operand.vmem [shape: f32[8,1], index: 3, kind: input, shape index: {}]   ;;  %s1322_s4 = inlined_call_operand.hbm [shape: f32[2,8,256], index: 4, kind: output, shape index: {}]  }
   0x1   :  { %11 = vsyncpa [#allocation3 + $0x1], 0  ;;  %s881_s15 = smov 0   ;;  %s883_s16 = smov 0  }
   0x2   :  { %s885_s17 = smov 0   ;;  %s887_s18 = smov 0  }
   0x3   :  { %s889_s19 = smov 0   ;;  %s891_s20 = smov 0  }
   0x4 LB: > { %s648_s21 = sadd.s32 4294967295, %s853_s20   ;;  %s649_s22 = sadd.s32 4294967294, %s853_s20   ;;  %s853_s20 = sphi %s891_s20, %s17_s20   ;;  %s849_s19 = sphi %s889_s19, %s1372_s19   ;;  %s845_s18 = sphi %s887_s18, %s1371_s18   ;;  %s841_s17 = sphi %s885_s17, %s1370_s17   ;;  %s837_s16 = sphi %s883_s16, %s1369_s16   ;;  %s833_s15 = sphi %s881_s15, %s1368_s15  }
   0x5   : > { %s29_s23 = sadd.s32 1, %s849_s19  ;;  %s129_s24 = sadd.s32 1, %s841_s17 }
   0x6   : > { %p31_p0 = scmp.ge.s32.totalorder %s29_s23, 2  ;;  %p139_p1 = scmp.ne.s32.totalorder %s841_s17, %s837_s16 }
   0x7   : > { %p140_p2 = scmp.eq.s32.totalorder %s648_s21, 1  ;;  %p145_p3 = scmp.ne.s32.totalorder %s837_s16, %s833_s15 }
   0x8   : > { %s1374_s23 = smov (%p31_p0, %s29_s23), 0  ;;  %p146_p5 = scmp.eq.s32.totalorder %s649_s22, 1 }
   0x9   : > { %p921_p4 = por %p140_p2, %p139_p1  ;;  %s124_s26 = ssub.s32 %s849_s19, %s1374_s23 }
   0xa   : > { %p652_p6 = scmp.ge.s32.totalorder %s853_s20, 1  ;;  %p127_p7 = scmp.eq.s32.totalorder %s124_s26, 0 }
   0xb   : > { %p928_p8 = por %p146_p5, %p145_p3  ;;  %p186_p9 = scmp.lt.s32.totalorder %s853_s20, 3 }
   0xc   : > { %s934_s28 = scalar_select %p127_p7, %s841_s17, %s129_s24  }
   0xd   : > { %p187_p10 = pnand %p652_p6, %p186_p9 }
   0xe   : > { %p217_p11 = scmp.lt.s32.totalorder (!%p187_p10), %s845_s18, 1  ;;  %s213_s6 = sand.u32 (!%p187_p10), 1, %s837_s16  }
   0xf   : > { %190 = sbr.rel (%p187_p10) target bundleno = 175 (0xaf), region = 36  ;;  %s653_s7 = sshll.u32 (!%p187_p10), %s213_s6, 4 }
  0x10   : > { %s674_s8 = sshll.u32 (!%p187_p10), %s845_s18, 4  ;;  %s215_s12 = scalar_lea.vmem (!%p187_p10), [#allocation2], %s653_s7 }
  0x11   : > { %s567_s11 = scalar_lea.hbm (!%p187_p10), %s1322_s4, %s674_s8  ;;  %s569_s13 = sshll.u32 (!%p187_p10), %s215_s12, 4  ;;  %s570_s13 = int_to_ptr.vmem [resolvable:$true] %s569_s13 }
  0x12   : > { %s571_s14 = sshll.u32 (!%p187_p10), %s567_s11, 4  ;;  %s795_s29 = scalar_lea.hbm (!%p187_p10), %s1322_s4, 32  ;;  %s572_s14 = int_to_ptr.hbm [resolvable:$true] %s571_s14 }
  0x14   : > { %v481_v0 = vld [vmem:[%s1320_s2 + $0x10] sm:$0xff]  ;;  %v479_v1 = vld [vmem:[%s1320_s2] sm:$0xff]  ;;  %v855_v2 = vmov 0   ;;  %s218_s9 = scalar_select %p217_p11, %s845_s18, 1  ;;  %vm1323_vm0 = vcmask 1043456   ;;  %v482_v4 = vld [vmem:[%s1320_s2 + $0x18] sm:$0xff] }
  0x15   : > { %733 = vset.pattern.permute.xlu1 %v855_v2  ;;  %732 = vset.pattern.permute.xlu0 %v855_v2  ;;  %v483_v3 = vld [vmem:[%s1320_s2 + $0x20] sm:$0xf]  ;;  %v480_v5 = vld [vmem:[%s1320_s2 + $0x8] sm:$0xff]  ;;  %vm238_vm1 = vcmask 293888   ;;  %s554_s18 = scalar_lea.sflag [#allocation3], %s213_s6 }
  0x16   : > { %496 = vperm.xlu1 %733, %v481_v0   ;;  %486 = vperm.xlu0 %732, %v479_v1   ;;  %s675_s10 = smul.u32 80, %s218_s9  ;;  %v543_v10 = vld [vmem:[%s1321_s3] sm:$0xff] }
  0x17   : > { %734 = vset.pattern.permute.xlu2 %v855_v2  ;;  %v237_v17 = vld [vmem:[%s1319_s1] sm:$0xff] }
  0x18   : > { %506 = vperm.xlu2 %734, %v483_v3   ;;  %s224_s21 = scalar_lea.vmem %s1318_s0, %s675_s10 }
  0x19   : > { %v235_v6 = vld [vmem:[%s224_s21 + $0x40] sm:$0xf]  ;;  %v236_v7 = vld [vmem:[%s224_s21 + $0x48] sm:$0xf]  ;;  %v233_v8 = vld [vmem:[%s224_s21 + $0x30] sm:$0xff] }
  0x1a   : > { %655 = vmatpush.msk.msra.mxu0 %vm1323_vm0, %v235_v6  ;;  %657 = vmatpush.msk.msra.mxu1 %vm1323_vm0, %v236_v7  ;;  %v234_v9 = vld [vmem:[%s224_s21 + $0x38] sm:$0xff]  ;;  %v231_v11 = vld [vmem:[%s224_s21 + $0x20] sm:$0xff]  ;;  %v232_v12 = vld [vmem:[%s224_s21 + $0x28] sm:$0xff]  ;;  %v667_v22 = vmul.f32 -1.442695, %v235_v6 }
  0x1b   : > { %v229_v13 = vld [vmem:[%s224_s21 + $0x10] sm:$0xff]  ;;  %v230_v14 = vld [vmem:[%s224_s21 + $0x18] sm:$0xff]  ;;  %v227_v15 = vld [vmem:[%s224_s21] sm:$0xff]  ;;  %v663_v18 = vmul.f32 -1.442695, %v231_v11 }
  0x1c   : > { %261 = vmatpush.msra.mxu0 %v233_v8  ;;  %281 = vmatpush.msra.mxu1 %v234_v9  ;;  %v228_v16 = vld [vmem:[%s224_s21 + $0x8] sm:$0xff]  ;;  %v659_v19 = vmul.f32 -1.442695, %v227_v15  ;;  %v664_v21 = vmul.f32 -1.442695, %v232_v12  ;;  %s789_s21 = sshra.s32 %s572_s14, 4  ;;  %s790_s21 = int_to_ptr.hbm [resolvable:$true] %s789_s21 }
  0x1d   : > { %v660_v20 = vmul.f32 -1.442695, %v228_v16  ;;  %735 = vpow2.f32 %v663_v18  ;;  %v668_v24 = vmul.f32 -1.442695, %v236_v7  ;;  %v661_v26 = vmul.f32 -1.442695, %v229_v13  ;;  %p796_p1 = scmp.lt.s32.totalorder %s790_s21, %s1322_s4 }
  0x1e   : > { %501 = vperm.xlu1 %733, %v482_v4   ;;  %491 = vperm.xlu0 %732, %v480_v5   ;;  %737 = vpow2.f32 %v659_v19  ;;  %v662_v28 = vmul.f32 -1.442695, %v230_v14  ;;  %v665_v34 = vmul.f32 -1.442695, %v233_v8  ;;  %v666_v35 = vmul.f32 -1.442695, %v234_v9 }
  0x1f   : > { %262 = vmatpush.msra.mxu0 %v231_v11  ;;  %282 = vmatpush.msra.mxu1 %v232_v12  ;;  %739 = vpow2.f32 %v660_v20  ;;  %s791_s22 = scalar_lea.hbm %s790_s21, 16 }
  0x20   : > { %546 = vperm.xlu2 %734, %v543_v10   ;;  %741 = vpow2.f32 %v664_v21  ;;  %p792_p12 = scmp.ne.s32.totalorder %s790_s21, %s791_s22  ;;  %p797_p2 = scmp.lt.s32.totalorder %s795_s29, %s791_s22 }
  0x21   : > { %263 = vmatpush.msra.mxu0 %v229_v13  ;;  %283 = vmatpush.msra.mxu1 %v230_v14  ;;  %743 = vpow2.f32 %v667_v22 }
  0x22   : > { %745 = vpow2.f32 %v668_v24  ;;  %p793_p13 = pnand %p792_p12, %p921_p4  ;;  %p798_p3 = por %p797_p2, %p796_p1 }
  0x23   : > { %264 = vmatpush.msra.mxu0 %v227_v15  ;;  %284 = vmatpush.msra.mxu1 %v228_v16  ;;  %v736_v23 = vpop.eup %735  ;;  %747 = vpow2.f32 %v661_v26 }
  0x24   : > { %656 = vmatmul.msk.f32.vlgmr.msra.gmra.mxu0 %vm238_vm1, %v237_v17  ;;  %658 = vmatmul.msk.f32.vlgmr.msra.gmra.mxu1 %vm238_vm1, %v237_v17  ;;  %v738_v25 = vpop.eup %737  ;;  %v964_v30 = vadd.f32 1.0, %v736_v23  ;;  %749 = vpow2.f32 %v662_v28  ;;  %p794_p0 = pneg %p793_p13 }
  0x25   : > { %v740_v27 = vpop.eup %739  ;;  %v966_v31 = vadd.f32 1.0, %v738_v25 }
  0x26   : > { %v742_v29 = vpop.eup %741  ;;  %v968_v32 = vadd.f32 1.0, %v740_v27  ;;  %751 = vrcp.f32 %v964_v30  ;;  %vm394_vm2 = vweird.f32 %v964_v30  ;;  %v400_v5 = vand.u32 2147483648, %v964_v30  ;;  %p799_p5 = pnand %p798_p3, %p794_p0 }
  0x27   : > { %v970_v33 = vadd.f32 1.0, %v742_v29  ;;  %753 = vrcp.f32 %v966_v31  ;;  %v744_v36 = vpop.eup %743  ;;  %v340_v63 = vand.u32 2147483648, %v966_v31  ;;  %vm334_vm4 = vweird.f32 %v966_v31 }
  0x28   : > { %755 = vrcp.f32 %v968_v32  ;;  %v746_v37 = vpop.eup %745  ;;  %v982_v43 = vadd.f32 1.0, %v744_v36  ;;  %v355_v3 = vand.u32 2147483648, %v968_v32  ;;  %v338_v12 = vand.u32 2147483647, %v966_v31 }
  0x29   : > { %757 = vrcp.f32 %v970_v33  ;;  %v748_v38 = vpop.eup %747  ;;  %v986_v46 = vadd.f32 1.0, %v746_v37  ;;  %vm409_vm6 = vweird.f32 %v970_v33  ;;  %v1048_v13 = vor.u32 1.1754944e-38, %v340_v63 }
  0x2a   : > { %759 = vpow2.f32 %v665_v34  ;;  %v750_v39 = vpop.eup %749  ;;  %v992_v50 = vadd.f32 1.0, %v748_v38  ;;  %vm349_vm9 = vweird.f32 %v968_v32  ;;  %v398_v15 = vand.u32 2147483647, %v964_v30 }
  0x2b   : > { %761 = vpow2.f32 %v666_v35  ;;  %v997_v52 = vadd.f32 1.0, %v750_v39  ;;  %v1071_v20 = vor.u32 1.1754944e-38, %v400_v5  ;;  %v413_v26 = vand.u32 2147483647, %v970_v33 }
  0x2c   : > { %v976_v40 = vpop.eup %751  ;;  %763 = vrcp.f32 %v982_v43  ;;  %v415_v27 = vand.u32 2147483648, %v970_v33  ;;  %v460_v34 = vand.u32 2147483648, %v982_v43  ;;  %vm454_vm14 = vweird.f32 %v982_v43 }
  0x2d   : > { %v978_v41 = vpop.eup %753  ;;  %v390_v47 = vmul.f32 %v976_v40, %v964_v30  ;;  %765 = vrcp.f32 %v986_v46  ;;  %vm395_vm3 = vweird.f32 %v976_v40  ;;  %v353_v30 = vand.u32 2147483647, %v968_v32 }
  0x2e   : > { %v980_v42 = vpop.eup %755  ;;  %v330_v48 = vmul.f32 %v978_v41, %v966_v31  ;;  %767 = vrcp.f32 %v992_v50  ;;  %vm335_vm5 = vweird.f32 %v978_v41  ;;  %vm1043_vm8 = vmor %vm394_vm2, %vm395_vm3  ;;  %v458_v31 = vand.u32 2147483647, %v982_v43 }
  0x2f   : > { %v984_v44 = vpop.eup %757  ;;  %v345_v51 = vmul.f32 %v980_v42, %v968_v32  ;;  %v391_v56 = vsub.f32 1.0, %v390_v47  ;;  %769 = vrcp.f32 %v997_v52  ;;  %vm350_vm10 = vweird.f32 %v980_v42  ;;  %vm1062_vm11 = vmor %vm334_vm4, %vm335_vm5 }
  0x30   : > { %v760_v45 = vpop.eup %759  ;;  %v405_v53 = vmul.f32 %v984_v44, %v970_v33  ;;  %v331_v57 = vsub.f32 1.0, %v330_v48  ;;  %vm410_vm7 = vweird.f32 %v984_v44  ;;  %vm1095_vm13 = vmor %vm349_vm9, %vm350_vm10  ;;  %vm1124_vm2 = vcmp.eq.f32.partialorder %v338_v12, 8.507059e+37 }
  0x31   : > { %v762_v49 = vpop.eup %761  ;;  %v1001_v54 = vadd.f32 1.0, %v760_v45  ;;  %v346_v58 = vsub.f32 1.0, %v345_v51  ;;  %v392_v61 = vmul.f32 %v976_v40, %v391_v56  ;;  %vm1077_vm12 = vmor %vm409_vm6, %vm410_vm7  ;;  %v1118_v45 = vor.u32 1.1754944e-38, %v355_v3 }
  0x32   : > { %v1004_v55 = vadd.f32 1.0, %v762_v49  ;;  %v406_v59 = vsub.f32 1.0, %v405_v53  ;;  %v1009_v60 = vpop.eup %763  ;;  %v332_v62 = vmul.f32 %v978_v41, %v331_v57  ;;  %vm1128_vm3 = vcmp.eq.f32.partialorder %v353_v30, 8.507059e+37 }
  0x33   : > { %771 = vrcp.f32 %v1001_v54  ;;  %v347_v0 = vmul.f32 %v980_v42, %v346_v58  ;;  %v1016_v1 = vpop.eup %765  ;;  %v450_v6 = vmul.f32 %v1009_v60, %v982_v43  ;;  %v1032_v8 = vadd.f32 %v976_v40, %v392_v61 }
  0x34   : > { %773 = vrcp.f32 %v1004_v55  ;;  %v407_v2 = vmul.f32 %v984_v44, %v406_v59  ;;  %v1022_v4 = vpop.eup %767  ;;  %v1037_v9 = vadd.f32 %v978_v41, %v332_v62  ;;  %v465_v23 = vmul.f32 %v1016_v1, %v986_v46 }
  0x35   : > { %v1029_v7 = vpop.eup %769  ;;  %v1067_v18 = vadd.f32 %v980_v42, %v347_v0  ;;  %v360_v19 = vmul.f32 %v1022_v4, %v992_v50  ;;  %v451_v22 = vsub.f32 1.0, %v450_v6  ;;  %v397_v25 = vsel %vm1043_vm8, %v976_v40, %v1032_v8 }
  0x36   : > { %v1056_v16 = vadd.f32 %v984_v44, %v407_v2  ;;  %v375_v24 = vmul.f32 %v1029_v7, %v997_v52  ;;  %v337_v37 = vsel %vm1062_vm11, %v978_v41, %v1037_v9  ;;  %v466_v48 = vsub.f32 1.0, %v465_v23 }
  0x37   : > { %v361_v38 = vsub.f32 1.0, %v360_v19  ;;  %v352_v32 = vsel %vm1095_vm13, %v980_v42, %v1067_v18  ;;  %v452_v47 = vmul.f32 %v1009_v60, %v451_v22  ;;  %vm455_vm15 = vweird.f32 %v1009_v60 }
  0x38   : > { %v412_v36 = vsel %vm1077_vm12, %v984_v44, %v1056_v16  ;;  %v376_v39 = vsub.f32 1.0, %v375_v24  ;;  %vm1132_vm4 = vcmp.eq.f32.partialorder %v458_v31, 8.507059e+37  ;;  %v461_v57 = vor.u32 1.1754944e-38, %v460_v34  ;;  %vm1154_vm0 = vmor %vm454_vm14, %vm455_vm15 }
  0x39   : > { %v1039_v10 = vpop.eup %771  ;;  %v473_v58 = vand.u32 2147483647, %v986_v46  ;;  %v475_v61 = vand.u32 2147483648, %v986_v46  ;;  %v362_v62 = vmul.f32 %v1022_v4, %v361_v38  ;;  %v453_v0 = vadd.f32 %v1009_v60, %v452_v47 }
  0x3a   : > { %v1052_v14 = vpop.eup %773  ;;  %v420_v29 = vmul.f32 %v1039_v10, %v1001_v54  ;;  %v377_v63 = vmul.f32 %v1029_v7, %v376_v39  ;;  %v467_v2 = vmul.f32 %v1016_v1, %v466_v48  ;;  %vm364_vm7 = vweird.f32 %v992_v50 }
  0x3b   : > { %v435_v35 = vmul.f32 %v1052_v14, %v1004_v55  ;;  %vm365_vm9 = vweird.f32 %v1022_v4  ;;  %vm1146_vm10 = vcmp.eq.f32.partialorder %v398_v15, 8.507059e+37  ;;  %vm379_vm1 = vweird.f32 %v997_v52 }
  0x3c   : > { %v421_v49 = vsub.f32 1.0, %v420_v29  ;;  %vm380_vm5 = vweird.f32 %v1029_v7  ;;  %v428_v12 = vand.u32 2147483647, %v1001_v54  ;;  %v370_v19 = vand.u32 2147483648, %v992_v50  ;;  %vm1167_vm14 = vmor %vm364_vm7, %vm365_vm9 }
  0x3d   : > { %v436_v59 = vsub.f32 1.0, %v435_v35  ;;  %v385_v43 = vand.u32 2147483648, %v997_v52  ;;  %v363_v22 = vadd.f32 %v1022_v4, %v362_v62  ;;  %v368_v24 = vand.u32 2147483647, %v992_v50  ;;  %vm1183_vm15 = vmor %vm379_vm1, %vm380_vm5 }
  0x3e   : > { %v422_v6 = vmul.f32 %v1039_v10, %v421_v49  ;;  %v378_v29 = vadd.f32 %v1029_v7, %v377_v63  ;;  %v383_v30 = vand.u32 2147483647, %v997_v52  ;;  %v457_v35 = vsel %vm1154_vm0, %v1009_v60, %v453_v0 }
  0x3f   : > { %v437_v15 = vmul.f32 %v1052_v14, %v436_v59  ;;  %v468_v38 = vadd.f32 %v1016_v1, %v467_v2  ;;  %v476_v39 = vor.u32 1.1754944e-38, %v475_v61  ;;  %v430_v47 = vand.u32 2147483648, %v1001_v54 }
  0x40   : > { %vm1349_vm7 = vweird.f32 %v1016_v1  ;;  %vm1350_vm9 = vweird.f32 %v986_v46  ;;  %v423_v60 = vadd.f32 %v1039_v10, %v422_v6  ;;  %v443_v52 = vand.u32 2147483647, %v1004_v55 }
  0x41   : > { %vm1191_vm6 = vmor %vm1350_vm9, %vm1349_vm7  ;;  %v438_v49 = vadd.f32 %v1052_v14, %v437_v15  ;;  %v445_v59 = vand.u32 2147483648, %v1004_v55  ;;  %v371_v61 = vor.u32 1.1754944e-38, %v370_v19  ;;  %v386_v62 = vor.u32 1.1754944e-38, %v385_v43 }
  0x42   : > { %vm1353_vm1 = vweird.f32 %v1039_v10  ;;  %vm1354_vm5 = vweird.f32 %v1001_v54  ;;  %v367_v63 = vsel %vm1167_vm14, %v1022_v4, %v363_v22  ;;  %vm369_vm9 = vcmp.eq.f32.partialorder %v368_v24, 8.507059e+37 }
  0x43   : > { %vm1205_vm7 = vmor %vm1354_vm5, %vm1353_vm1  ;;  %v382_v0 = vsel %vm1183_vm15, %v1029_v7, %v378_v29  ;;  %vm384_vm0 = vcmp.eq.f32.partialorder %v383_v30, 8.507059e+37  ;;  %vm1217_vm12 = vcmp.eq.f32.partialorder %v413_v26, 8.507059e+37  ;;  %v416_v54 = vor.u32 1.1754944e-38, %v415_v27 }
  0x44   : > { %v472_v5 = vsel %vm1191_vm6, %v1016_v1, %v468_v38  ;;  %vm474_vm14 = vcmp.eq.f32.partialorder %v473_v58, 8.507059e+37  ;;  %vm1359_vm1 = vweird.f32 %v1052_v14  ;;  %vm1360_vm5 = vweird.f32 %v1004_v55 }
  0x45   : > { %vm1230_vm15 = vmor %vm1360_vm5, %vm1359_vm1  ;;  %v342_v33 = vsel %vm1124_vm2, %v1048_v13, %v337_v37  ;;  %v357_v55 = vsel %vm1128_vm3, %v1118_v45, %v352_v32  ;;  %v462_v1 = vsel %vm1132_vm4, %v461_v57, %v457_v35  ;;  %vm1252_vm6 = vcmp.eq.f32.partialorder %v428_v12, 8.507059e+37 }
  0x46   : > { %v431_v41 = vor.u32 1.1754944e-38, %v430_v47  ;;  %v446_v9 = vor.u32 1.1754944e-38, %v445_v59  ;;  %v372_v17 = vsel %vm369_vm9, %v371_v61, %v367_v63  ;;  %v387_v13 = vsel %vm384_vm0, %v386_v62, %v382_v0 }
  0x47   : > { %v477_v26 = vsel %vm474_vm14, %v476_v39, %v472_v5  ;;  %v427_v42 = vsel %vm1205_vm7, %v1039_v10, %v423_v60  ;;  %v442_v18 = vsel %vm1230_vm15, %v1052_v14, %v438_v49  ;;  %vm444_vm11 = vcmp.eq.f32.partialorder %v443_v52, 8.507059e+37 }
  0x48   : > { %v402_v27 = vsel %vm1146_vm10, %v1071_v20, %v397_v25  ;;  %v417_v10 = vsel %vm1217_vm12, %v416_v54, %v412_v36  ;;  %v432_v20 = vsel %vm1252_vm6, %v431_v41, %v427_v42  ;;  %v447_v25 = vsel %vm444_vm11, %v446_v9, %v442_v18 }
  0x49   : > { %vm1366_vm8 = vcmask 1043456  }
  0x4a   : > { %vm1367_vm12 = vmmov %vm1366_vm8 }
  0x72   : > { %v507_v32 = vpop.permute.xlu2 %506 }
  0x73   : > { %v517_v51 = vmul.f32 %v507_v32, %v462_v1  ;;  %v518_v40 = vmul.f32 %v507_v32, %v477_v26 }
  0x75   : > { %v522_v3 = vsel %vm1366_vm8, %v517_v51, 0.0  ;;  %v533_v6 = vsel %vm1367_vm12, %v518_v40, 0.0 }
  0x7a   : > { %v547_v59 = vpop.permute.xlu2 %546 }
  0x88   : > { %v497_v31 = vpop.permute.xlu1 %496  ;;  %v487_v34 = vpop.permute.xlu0 %486 }
  0x89   : > { %v509_v14 = vmul.f32 %v487_v34, %v342_v33  ;;  %v510_v37 = vmul.f32 %v487_v34, %v357_v55  ;;  %v513_v21 = vmul.f32 %v497_v31, %v402_v27  ;;  %v514_v53 = vmul.f32 %v497_v31, %v417_v10 }
  0x90   : > { %v492_v28 = vpop.permute.xlu0 %491  ;;  %v502_v8 = vpop.permute.xlu1 %501 }
  0x91   : > { %v511_v11 = vmul.f32 %v492_v28, %v372_v17  ;;  %v512_v45 = vmul.f32 %v492_v28, %v387_v13  ;;  %v515_v16 = vmul.f32 %v502_v8, %v432_v20  ;;  %v516_v36 = vmul.f32 %v502_v8, %v447_v25 }
  0x93   : > { %v519_v56 = vadd.f32 %v511_v11, %v509_v14  ;;  %v530_v44 = vadd.f32 %v512_v45, %v510_v37 }
  0x95   : > { %v520_v57 = vadd.f32 %v519_v56, %v513_v21  ;;  %v531_v58 = vadd.f32 %v530_v44, %v514_v53 }
  0x97   : > { %v521_v12 = vadd.f32 %v520_v57, %v515_v16  ;;  %v532_v15 = vadd.f32 %v531_v58, %v516_v36 }
  0x99   : > { %v523_v19 = vadd.f32 %v522_v3, %v521_v12  ;;  %v534_v43 = vadd.f32 %v533_v6, %v532_v15 }
  0x9b   : > { %v524_v22 = vrot.slane %v523_v19, 4  ;;  %v535_v23 = vrot.slane %v534_v43, 4 }
  0x9d   : > { %v525_v24 = vadd.f32 %v524_v22, %v523_v19  ;;  %v536_v29 = vadd.f32 %v535_v23, %v534_v43 }
  0x9f   : > { %v526_v30 = vrot.slane %v525_v24, 2  ;;  %v537_v31 = vrot.slane %v536_v29, 2 }
  0xa1   : > { %v527_v34 = vadd.f32 %v526_v30, %v525_v24  ;;  %v538_v35 = vadd.f32 %v537_v31, %v536_v29  ;;  %v266_v47 = vpop.f32.mrf.mxu0  ;;  %v286_v50 = vpop.f32.mrf.mxu1 }
  0xa3   : > { %v528_v38 = vrot.slane %v527_v34, 1  ;;  %v539_v39 = vrot.slane %v538_v35, 1 }
  0xa5   : > { %v529_v48 = vadd.f32 %v528_v38, %v527_v34  ;;  %v540_v60 = vadd.f32 %v539_v39, %v538_v35 }
  0xa7   : > { %v541_v52 = vmul.f32 %v529_v48, %v266_v47  ;;  %v542_v49 = vmul.f32 %v540_v60, %v286_v50 }
  0xa9   : > { %v549_v61 = vadd.f32 %v547_v59, %v541_v52  ;;  %v550_v62 = vadd.f32 %v547_v59, %v542_v49 }
  0xab   : > { %551 = vst [vmem:[%s215_s12] sm:$0xff] %v549_v61 }
  0xac   : > { %552 = vst [vmem:[%s215_s12 + $0x8] sm:$0xff] %v550_v62 }
  0xad   : > { %802 = shalt.err (!%p799_p5)
}
  0xae   : > { %676 = dma.vmem_to_hbm [thread:$0]  (%p921_p4), %s570_s13, 256, %s572_s14, %s554_s18  }
  0xaf PF: > { %p682_p6 = scmp.ge.s32.totalorder %s853_s20, 2  ;;  %s583_s6 = sand.u32 1, %s833_s15  }
  0xb0   : > { %s584_s7 = scalar_lea.sflag [#allocation3], %s583_s6 }
  0xb1   : > { %p679_p7 = pnand %p682_p6, %p928_p8 }
  0xb3   : > { %p680_p9 = pneg %p679_p7 }
  0xb5   : > { %828 = dma.done.wait (%p680_p9), %s584_s7, 256  }
  0xb6   : > { %830 = vsyncadd (%p680_p9), %s584_s7, 4294967040  ;;  %s17_s20 = sadd.s32 1, %s853_s20   ;;  %s1368_s15 = smov %s837_s16 }
  0xb7   : > { %p14_p10 = scmp.ge.s32.totalorder %s17_s20, 4   ;;  %s1369_s16 = smov %s841_s17 }
  0xb8   : > { %s1370_s17 = smov %s934_s28  ;;  %s1371_s18 = smov %s849_s19 }
  0xb9   : > { %s1372_s19 = smov %s1374_s23  ;;  %16 = sbr.rel (!%p14_p10) target bundleno = 4 (0x4), region = 71 }
  0xbe   :  { %590 = vsyncpa [#allocation3], 1 }
  0xbf   :  { %592 = vsyncpa [#allocation3 + $0x1], 1 }

</bundles_post_ra>
